<compile_context>
chip_gen: v7x
topology: tpu7x:2x2x1
jax: 0.10.0
libtpu: 0.0.40
codegen_flags: <defaults>
</compile_context>

<pallas_src>
import functools

import jax
import jax.numpy as jnp
import numpy as np
from jax.experimental import pallas as pl
from jax.experimental.pallas import tpu as pltpu

LAMBDA1 = 1000.0

# ------------------------------- tiling ---------------------------------------
_LANE = 128
_TILE_N_CAP = 65536                    # max lanes per grid step
_BUF_BUDGET_BYTES = 8 * 1024 * 1024    # budget for 2 inputs x 2 pipeline buffers
_VMEM_LIMIT_BYTES = 32 * 1024 * 1024   # explicit scoped-VMEM limit (v5e/v6e/v7x safe)


def _choose_tile_n(n, c):
    """Pick a lane tile: a multiple of 128 (or full N), sized for the VMEM budget."""
    pad_c = ((c + 7) // 8) * 8                         # sublane padding, f32 worst case
    per_lane = 2 * 2 * pad_c * 4                       # 2 arrays x 2 buffers x padded C x 4B
    cap = min(_TILE_N_CAP, max(_LANE, _BUF_BUDGET_BYTES // per_lane))
    if n <= cap:
        return n, 0                                    # full-N block (always legal)
    t = (cap // _LANE) * _LANE
    while t >= _LANE:                                  # largest 128-multiple divisor of N
        if n % t == 0:
            return t, 0
        t -= _LANE
    t = (cap // _LANE) * _LANE                         # no divisor: pad N with zeros
    return t, (-n) % t                                 # (zero masks => zero contribution)


# ------------------------- input-gradient penalty kernel ----------------------
def _rrr_grad_kernel(x_ref, m_ref, sq_ref, msum_ref):
    """For one (sample, N-tile): partial sum of (mask * d sum(softmax)/d input)^2
    and the partial mask sum (used for the per-sample selection predicate)."""
    x = x_ref[0].astype(jnp.float32)                   # (C, TN) cast on the VMEM tile
    m = m_ref[0].astype(jnp.float32)                   # (C, TN)

    # softmax over the channel axis (dim=1 of the original NCTHW tensor)
    xmax = jnp.max(x, axis=0, keepdims=True)           # (1, TN)
    e = jnp.exp(x - xmax)                              # (C, TN)
    denom = jnp.sum(e, axis=0, keepdims=True)          # (1, TN)
    s = e / denom                                      # (C, TN)

    # Analytic torch.autograd.grad(sum(softmax), inputs):  s * (1 - sum_c s)
    # (tiny-but-nonzero f32 rounding noise, exactly as in the torch module).
    ssum = jnp.sum(s, axis=0, keepdims=True)           # (1, TN)
    grad = s * (1.0 - ssum)                            # (C, TN)

    sq = (m * grad) ** 2                               # (C, TN)
    sq_sum = jnp.sum(jnp.sum(sq, axis=0, keepdims=True), axis=1, keepdims=True)
    m_sum = jnp.sum(jnp.sum(m, axis=0, keepdims=True), axis=1, keepdims=True)
    sq_ref[...] = sq_sum.reshape(1, 1, 1, 1)
    msum_ref[...] = m_sum.reshape(1, 1, 1, 1)


def _gradient_penalty_partials(x_bcn, m_bcn, tile_n):
    B, C, Np = x_bcn.shape
    n_blocks = Np // tile_n
    grid_spec = pl.GridSpec(
        grid=(B, n_blocks),
        in_specs=[
            pl.BlockSpec((1, C, tile_n), lambda b, n: (b, 0, n)),
            pl.BlockSpec((1, C, tile_n), lambda b, n: (b, 0, n)),
        ],
        out_specs=[
            pl.BlockSpec((1, 1, 1, 1), lambda b, n: (b, n, 0, 0)),
            pl.BlockSpec((1, 1, 1, 1), lambda b, n: (b, n, 0, 0)),
        ],
    )
    return pl.pallas_call(
        _rrr_grad_kernel,
        out_shape=(
            jax.ShapeDtypeStruct((B, n_blocks, 1, 1), jnp.float32),
            jax.ShapeDtypeStruct((B, n_blocks, 1, 1), jnp.float32),
        ),
        grid_spec=grid_spec,
        compiler_params=pltpu.CompilerParams(
            dimension_semantics=("parallel", "parallel"),
            vmem_limit_bytes=_VMEM_LIMIT_BYTES,
        ),
    )(x_bcn, m_bcn)


# --------------------------------- wrapper ------------------------------------
@functools.partial(jax.jit, static_argnames=("lambda1",))
def rrr_loss_jit(logits, targets, inputs, masks, lambda1=LAMBDA1):
    # Cross-entropy on a tiny (B, K) array: plain jnp (no extra pallas_call launch).
    x = logits.astype(jnp.float32)
    xmax = jnp.max(x, axis=1, keepdims=True)
    lse = xmax[:, 0] + jnp.log(jnp.sum(jnp.exp(x - xmax), axis=1))
    tgt = jnp.take_along_axis(x, targets.astype(jnp.int32)[:, None], axis=1)[:, 0]
    ce = jnp.mean(lse - tgt)

    # Input-gradient penalty (Pallas, HBM-bound): reshape only, keep native dtype.
    B, C = inputs.shape[0], inputs.shape[1]
    N = int(np.prod(inputs.shape[2:]))
    x_bcn = inputs.reshape(B, C, N)
    m_bcn = masks.reshape(B, C, N)

    tile_n, pad = _choose_tile_n(N, C)
    if pad:  # only if N has no 128-multiple divisor <= cap; zero-padded masks add 0.
        x_bcn = jnp.pad(x_bcn, ((0, 0), (0, 0), (0, pad)))
        m_bcn = jnp.pad(m_bcn, ((0, 0), (0, 0), (0, pad)))

    sq_part, m_part = _gradient_penalty_partials(x_bcn, m_bcn, tile_n)

    # Per-sample selection (masks[b].sum() > 0) and gating, on tiny (B, nN) partials.
    per_sample_sq = jnp.sum(sq_part.reshape(B, -1), axis=1)       # (B,)
    per_sample_msum = jnp.sum(m_part.reshape(B, -1), axis=1)      # (B,)
    sel = (per_sample_msum > 0).astype(jnp.float32)               # (B,)
    gradient_loss = jnp.sum(sel * per_sample_sq) / jnp.float32(B * C * N)  # mean over ALL elems

    total = ce + jnp.float32(lambda1) * gradient_loss
    return total, ce, gradient_loss


def rrr_loss(logits, targets, inputs, masks, lambda1=LAMBDA1):
    """logits: (B, K); targets: (B,) int; inputs/masks: (B, C, T, H, W) any float/bool dtype."""
    total, ce, grad_l = rrr_loss_jit(logits, targets, inputs, masks, lambda1=lambda1)
    losses = {
        "total_loss": float(total),   # mirrors torch .item(); forces a host sync
        "ce_loss": float(ce),
        "gradient_loss": float(grad_l),
    }
    return total, losses


# --------------------------------- demo ---------------------------------------
if __name__ == "__main__":
    key = jax.random.PRNGKey(0)
    k1, k2, k3, k4 = jax.random.split(key, 4)

    B, K = 2, 10
    C, T, H, W = 3, 4, 16, 16

    logits = jax.random.normal(k1, (B, K), dtype=jnp.float32)
    targets = jax.random.randint(k2, (B,), 0, K, dtype=jnp.int32)
    inputs = jax.random.normal(k3, (B, C, T, H, W), dtype=jnp.float32)

    # masks: sample 0 has an active (nonzero) mask, sample 1 is all-zero
    # (exercises the per-sample selection `masks.sum(dim=(1,2,3,4)) > 0`).
    m0 = (jax.random.uniform(k4, (1, C, T, H, W)) > 0.7).astype(jnp.float32)
    m1 = jnp.zeros((1, C, T, H, W), dtype=jnp.float32)
    masks = jnp.concatenate([m0, m1], axis=0)

    total, losses = rrr_loss(logits, targets, inputs, masks, lambda1=LAMBDA1)
    jax.block_until_ready(total)
    # TODO(synk): float()/.item()-style host syncs are kept only to mirror the torch module.
    print("KERNEL_OK")
</pallas_src>

<mosaic_0001>
module attributes {stable_mosaic.version = 11 : i64} {
  func.func @_rrr_grad_kernel(%arg0: i32, %arg1: i32, %arg2: memref<1x3x1024xf32, #tpu.memory_space<vmem>>, %arg3: memref<1x3x1024xf32, #tpu.memory_space<vmem>>, %arg4: memref<1x1x1x1xf32, #tpu.memory_space<vmem>>, %arg5: memref<1x1x1x1xf32, #tpu.memory_space<vmem>>) attributes {dimension_semantics = [#tpu.dimension_semantics<parallel>, #tpu.dimension_semantics<parallel>], iteration_bounds = array<i64: 2, 1>, scalar_prefetch = 0 : i64, scratch_operands = 0 : i64, tpu.core_type = #tpu.core_type<tc>, window_params = [{transform_indices = @transform_0, window_bounds = array<i64: 1, 3, 1024>}, {transform_indices = @transform_1, window_bounds = array<i64: 1, 3, 1024>}, {transform_indices = @transform_2, window_bounds = array<i64: 1, 1, 1, 1>}, {transform_indices = @transform_3, window_bounds = array<i64: 1, 1, 1, 1>}]} {
    %c0 = arith.constant 0 : index
    %c0_0 = arith.constant 0 : index
    %c0_1 = arith.constant 0 : index
    %0 = vector.load %arg2[%c0, %c0_0, %c0_1] : memref<1x3x1024xf32, #tpu.memory_space<vmem>>, vector<1x3x1024xf32>
    %1 = vector.shape_cast %0 : vector<1x3x1024xf32> to vector<3x1024xf32>
    %c0_2 = arith.constant 0 : index
    %c0_3 = arith.constant 0 : index
    %c0_4 = arith.constant 0 : index
    %2 = vector.load %arg3[%c0_2, %c0_3, %c0_4] : memref<1x3x1024xf32, #tpu.memory_space<vmem>>, vector<1x3x1024xf32>
    %3 = vector.shape_cast %2 : vector<1x3x1024xf32> to vector<3x1024xf32>
    %cst = arith.constant dense<0xFF800000> : vector<1024xf32>
    %4 = vector.multi_reduction <maximumf>, %1, %cst [0] : vector<3x1024xf32> to vector<1024xf32>
    %5 = vector.shape_cast %4 : vector<1024xf32> to vector<1x1024xf32>
    %6 = vector.broadcast %5 : vector<1x1024xf32> to vector<3x1024xf32>
    %7 = arith.subf %1, %6 : vector<3x1024xf32>
    %8 = math.exp %7 : vector<3x1024xf32>
    %cst_5 = arith.constant dense<0.000000e+00> : vector<1024xf32>
    %9 = vector.multi_reduction <add>, %8, %cst_5 [0] : vector<3x1024xf32> to vector<1024xf32>
    %10 = vector.shape_cast %9 : vector<1024xf32> to vector<1x1024xf32>
    %11 = vector.broadcast %10 : vector<1x1024xf32> to vector<3x1024xf32>
    %12 = arith.divf %8, %11 : vector<3x1024xf32>
    %cst_6 = arith.constant dense<0.000000e+00> : vector<1024xf32>
    %13 = vector.multi_reduction <add>, %12, %cst_6 [0] : vector<3x1024xf32> to vector<1024xf32>
    %14 = vector.shape_cast %13 : vector<1024xf32> to vector<1x1024xf32>
    %cst_7 = arith.constant 1.000000e+00 : f32
    %15 = vector.broadcast %cst_7 : f32 to vector<1x1024xf32>
    %16 = arith.subf %15, %14 : vector<1x1024xf32>
    %17 = vector.broadcast %16 : vector<1x1024xf32> to vector<3x1024xf32>
    %18 = arith.mulf %12, %17 : vector<3x1024xf32>
    %19 = arith.mulf %3, %18 : vector<3x1024xf32>
    %20 = arith.mulf %19, %19 : vector<3x1024xf32>
    %cst_8 = arith.constant dense<0.000000e+00> : vector<1024xf32>
    %21 = vector.multi_reduction <add>, %20, %cst_8 [0] : vector<3x1024xf32> to vector<1024xf32>
    %22 = vector.shape_cast %21 : vector<1024xf32> to vector<1x1024xf32>
    %cst_9 = arith.constant dense<0.000000e+00> : vector<1xf32>
    %23 = vector.multi_reduction <add>, %22, %cst_9 [1] : vector<1x1024xf32> to vector<1xf32>
    %24 = vector.shape_cast %23 : vector<1xf32> to vector<1x1xf32>
    %cst_10 = arith.constant dense<0.000000e+00> : vector<1024xf32>
    %25 = vector.multi_reduction <add>, %3, %cst_10 [0] : vector<3x1024xf32> to vector<1024xf32>
    %26 = vector.shape_cast %25 : vector<1024xf32> to vector<1x1024xf32>
    %cst_11 = arith.constant dense<0.000000e+00> : vector<1xf32>
    %27 = vector.multi_reduction <add>, %26, %cst_11 [1] : vector<1x1024xf32> to vector<1xf32>
    %28 = vector.shape_cast %27 : vector<1xf32> to vector<1x1xf32>
    %29 = vector.shape_cast %24 : vector<1x1xf32> to vector<1x1x1x1xf32>
    %c0_12 = arith.constant 0 : index
    %c0_13 = arith.constant 0 : index
    %c0_14 = arith.constant 0 : index
    %c0_15 = arith.constant 0 : index
    %30 = vector.load %arg4[%c0_12, %c0_13, %c0_14, %c0_15] : memref<1x1x1x1xf32, #tpu.memory_space<vmem>>, vector<1x1x1x1xf32>
    tpu.vector_store %arg4[%c0_12, %c0_13, %c0_14, %c0_15], %29 {strides = array<i32>} : memref<1x1x1x1xf32, #tpu.memory_space<vmem>>, vector<1x1x1x1xf32>,
    %31 = vector.shape_cast %28 : vector<1x1xf32> to vector<1x1x1x1xf32>
    %c0_16 = arith.constant 0 : index
    %c0_17 = arith.constant 0 : index
    %c0_18 = arith.constant 0 : index
    %c0_19 = arith.constant 0 : index
    %32 = vector.load %arg5[%c0_16, %c0_17, %c0_18, %c0_19] : memref<1x1x1x1xf32, #tpu.memory_space<vmem>>, vector<1x1x1x1xf32>
    tpu.vector_store %arg5[%c0_16, %c0_17, %c0_18, %c0_19], %31 {strides = array<i32>} : memref<1x1x1x1xf32, #tpu.memory_space<vmem>>, vector<1x1x1x1xf32>,
    return
  }
  func.func @transform_0(%arg0: i32, %arg1: i32) -> (i32, i32, i32) {
    %c0_i32 = arith.constant 0 : i32
    %c0_i32_0 = arith.constant 0 : i32
    return %arg0, %c0_i32, %arg1 : i32, i32, i32
  }
  func.func @transform_1(%arg0: i32, %arg1: i32) -> (i32, i32, i32) {
    %c0_i32 = arith.constant 0 : i32
    %c0_i32_0 = arith.constant 0 : i32
    return %arg0, %c0_i32, %arg1 : i32, i32, i32
  }
  func.func @transform_2(%arg0: i32, %arg1: i32) -> (i32, i32, i32, i32) {
    %c0_i32 = arith.constant 0 : i32
    %c0_i32_0 = arith.constant 0 : i32
    %c0_i32_1 = arith.constant 0 : i32
    return %arg0, %arg1, %c0_i32, %c0_i32_0 : i32, i32, i32, i32
  }
  func.func @transform_3(%arg0: i32, %arg1: i32) -> (i32, i32, i32, i32) {
    %c0_i32 = arith.constant 0 : i32
    %c0_i32_0 = arith.constant 0 : i32
    %c0_i32_1 = arith.constant 0 : i32
    return %arg0, %arg1, %c0_i32, %c0_i32_0 : i32, i32, i32, i32
  }
}

</mosaic_0001>

<bundles_post_ra>
// kernel: rrr_loss_jit.1
= control target key start
LH: loop header
LB: loop body
LE: loop exit
PB: predicated region body
PF: predicated region fallthrough
CT: control target
= control target key end

     0   :  { %s943_s12 = smov 0   ;;  %s945_s13 = smov 0   ;;  %s1201_s0 = inlined_call_operand.vmem [shape: f32[2,3,1024], index: 0, kind: input, shape index: {}]   ;;  %s1202_s1 = inlined_call_operand.vmem [shape: f32[2,3,1024], index: 1, kind: input, shape index: {}]   ;;  %s1203_s2 = inlined_call_operand.vmem [shape: f32[2,1,1,1], index: 2, kind: output, shape index: {0}]   ;;  %s1204_s3 = inlined_call_operand.vmem [shape: f32[2,1,1,1], index: 3, kind: output, shape index: {1}]  }
   0x1   :  { %s947_s14 = smov 0  }
   0x2 LB: > { %s26_s15 = sadd.s32 1, %s917_s13  ;;  %p842_p0 = scmp.ge.s32.totalorder %s921_s14, 1  ;;  %s921_s14 = sphi %s947_s14, %s14_s14   ;;  %s917_s13 = sphi %s945_s13, %s1206_s13   ;;  %s913_s12 = sphi %s943_s12, %s1205_s12  }
   0x3   : > { %p28_p1 = scmp.ge.s32.totalorder %s26_s15, 2  ;;  %p180_p2 = scmp.lt.s32.totalorder %s921_s14, 3 }
   0x5   : > { %s1208_s15 = smov (%p28_p1, %s26_s15), 0  ;;  %p181_p3 = pnand %p842_p0, %p180_p2 }
   0x6   : > { %p225_p4 = scmp.lt.s32.totalorder (!%p181_p3), %s913_s12, 1  ;;  %vm276_vm0 = vcmask (!%p181_p3), 1042432   ;;  %vm711_vm1 = vcmask (!%p181_p3), 0  }
   0x7   : > { %184 = sbr.rel (%p181_p3) target bundleno = 281 (0x119), region = 28 }
   0xe   : > { %s1210_s12 = smov (!%p225_p4, %s913_s12), 1 }
   0xf   : > { %s849_s16 = sshll.u32 %s1210_s12, 5  ;;  %s249_s25 = scalar_lea.vmem %s1203_s2, %s1210_s12 }
  0x10   : > { %s232_s19 = scalar_lea.vmem %s1201_s0, %s849_s16  ;;  %s1005_s22 = scalar_lea.vmem %s1202_s1, %s849_s16 }
  0x11   : > { %v969_v0 = vld [vmem:[%s232_s19] sm:$0x77]  ;;  %v971_v1 = vld [vmem:[%s232_s19 + $0x8] sm:$0x77]  ;;  %v973_v2 = vld [vmem:[%s232_s19 + $0x10] sm:$0x77]  ;;  %s255_s28 = scalar_lea.vmem %s1204_s3, %s1210_s12 }
  0x12   : > { %v975_v3 = vld [vmem:[%s232_s19 + $0x18] sm:$0x77]  ;;  %v268_v4 = vcombine.high %v969_v0, %v969_v0  ;;  %v269_v5 = vcombine.high %v971_v1, %v971_v1  ;;  %v270_v6 = vcombine.high %v973_v2, %v973_v2  ;;  %v277_v8 = vsel %vm276_vm0, %v969_v0, -inf }
  0x13   : > { %v271_v7 = vcombine.high %v975_v3, %v975_v3  ;;  %v291_v9 = vsel %vm276_vm0, %v971_v1, -inf  ;;  %v278_v10 = vrot.slane %v277_v8, 4  ;;  %v305_v16 = vsel %vm276_vm0, %v973_v2, -inf }
  0x14   : > { %v284_v11 = vsel %vm276_vm0, %v268_v4, -inf  ;;  %v292_v12 = vrot.slane %v291_v9, 4  ;;  %v298_v13 = vsel %vm276_vm0, %v269_v5, -inf  ;;  %v312_v17 = vsel %vm276_vm0, %v270_v6, -inf }
  0x15   : > { %v285_v14 = vrot.slane %v284_v11, 4  ;;  %v299_v15 = vrot.slane %v298_v13, 4  ;;  %v279_v18 = vmax.f32 %v277_v8, %v278_v10  ;;  %v306_v20 = vrot.slane %v305_v16, 4 }
  0x16   : > { %v293_v19 = vmax.f32 %v291_v9, %v292_v12  ;;  %v313_v21 = vrot.slane %v312_v17, 4  ;;  %v319_v24 = vsel %vm276_vm0, %v975_v3, -inf  ;;  %v326_v25 = vsel %vm276_vm0, %v271_v7, -inf }
  0x17   : > { %v286_v22 = vmax.f32 %v284_v11, %v285_v14  ;;  %v300_v23 = vmax.f32 %v298_v13, %v299_v15  ;;  %v280_v26 = vrot.slane %v279_v18, 2  ;;  %v307_v28 = vmax.f32 %v305_v16, %v306_v20  ;;  %v1016_v16 = vld [vmem:[%s1005_s22 + $0x8] sm:$0x77] }
  0x18   : > { %v294_v27 = vrot.slane %v293_v19, 2  ;;  %v314_v29 = vmax.f32 %v312_v17, %v313_v21  ;;  %v320_v32 = vrot.slane %v319_v24, 4  ;;  %v327_v33 = vrot.slane %v326_v25, 4 }
  0x19   : > { %v287_v30 = vrot.slane %v286_v22, 2  ;;  %v301_v31 = vrot.slane %v300_v23, 2  ;;  %v281_v34 = vmax.f32 %v279_v18, %v280_v26  ;;  %v308_v36 = vrot.slane %v307_v28, 2 }
  0x1a   : > { %v295_v35 = vmax.f32 %v293_v19, %v294_v27  ;;  %v315_v37 = vrot.slane %v314_v29, 2  ;;  %v321_v40 = vmax.f32 %v319_v24, %v320_v32  ;;  %v328_v41 = vmax.f32 %v326_v25, %v327_v33 }
  0x1b   : > { %v288_v38 = vmax.f32 %v286_v22, %v287_v30  ;;  %v302_v39 = vmax.f32 %v300_v23, %v301_v31  ;;  %v282_v42 = vrot.slane %v281_v34, 1  ;;  %v309_v44 = vmax.f32 %v307_v28, %v308_v36 }
  0x1c   : > { %v296_v43 = vrot.slane %v295_v35, 1  ;;  %v316_v45 = vmax.f32 %v314_v29, %v315_v37  ;;  %v322_v48 = vrot.slane %v321_v40, 2  ;;  %v329_v49 = vrot.slane %v328_v41, 2 }
  0x1d   : > { %v289_v46 = vrot.slane %v288_v38, 1  ;;  %v303_v47 = vrot.slane %v302_v39, 1  ;;  %v283_v50 = vmax.f32 %v281_v34, %v282_v42  ;;  %v310_v52 = vrot.slane %v309_v44, 1 }
  0x1e   : > { %v297_v51 = vmax.f32 %v295_v35, %v296_v43  ;;  %v317_v53 = vrot.slane %v316_v45, 1  ;;  %v323_v56 = vmax.f32 %v321_v40, %v322_v48  ;;  %v330_v57 = vmax.f32 %v328_v41, %v329_v49 }
  0x1f   : > { %v290_v54 = vmax.f32 %v288_v38, %v289_v46  ;;  %v304_v55 = vmax.f32 %v302_v39, %v303_v47  ;;  %v311_v58 = vmax.f32 %v309_v44, %v310_v52  ;;  %v639_v20 = vcombine.high %v1016_v16, %v1016_v16 }
  0x20   : > { %v318_v59 = vmax.f32 %v316_v45, %v317_v53  ;;  %v324_v60 = vrot.slane %v323_v56, 1  ;;  %v331_v61 = vrot.slane %v330_v57, 1 }
  0x21   : > { %v341_v62 = vcombine.low %v283_v50, %v290_v54  ;;  %v342_v63 = vcombine.low %v297_v51, %v304_v55 }
  0x22   : > { %v343_v4 = vcombine.low %v311_v58, %v318_v59  ;;  %v325_v5 = vmax.f32 %v323_v56, %v324_v60  ;;  %v332_v6 = vmax.f32 %v330_v57, %v331_v61 }
  0x23   : > { %v349_v7 = vsub.f32 %v969_v0, %v341_v62  ;;  %v350_v8 = vsub.f32 %v971_v1, %v342_v63  ;;  %v1009_v1 = vld [vmem:[%s1005_s22] sm:$0x77] }
  0x24   : > { %v351_v9 = vsub.f32 %v973_v2, %v343_v4  ;;  %v344_v10 = vcombine.low %v325_v5, %v332_v6  ;;  %v638_v2 = vcombine.high %v1009_v1, %v1009_v1  ;;  %v646_v15 = vsel %vm276_vm0, %v1009_v1, 0.0 }
  0x25   : > { %v353_v11 = vmul.f32 1.442695, %v349_v7  ;;  %v355_v12 = vmul.f32 1.442695, %v350_v8  ;;  %v647_v17 = vrot.slane %v646_v15, 4 }
  0x26   : > { %v357_v13 = vmul.f32 1.442695, %v351_v9  ;;  %v352_v14 = vsub.f32 %v975_v3, %v344_v10  ;;  %v1019_v18 = vsel %vm276_vm0, %v638_v2, 0.0  ;;  %v1023_v3 = vsel %vm276_vm0, %v1016_v16, 0.0 }
  0x27   : > { %883 = vpow2.f32 %v353_v11  ;;  %v654_v24 = vrot.slane %v1019_v18, 4  ;;  %v661_v25 = vrot.slane %v1023_v3, 4  ;;  %v1043_v30 = vadd.f32 %v647_v17, %v646_v15 }
  0x28   : > { %885 = vpow2.f32 %v355_v12  ;;  %v359_v0 = vmul.f32 1.442695, %v352_v14 }
  0x29   : > { %887 = vpow2.f32 %v357_v13 }
  0x2a   : > { %889 = vpow2.f32 %v359_v0 }
  0x31   : > { %v1025_v19 = vpop.eup %883 }
  0x32   : > { %v1029_v21 = vpop.eup %885  ;;  %v365_v22 = vcombine.high %v1025_v19, %v1025_v19  ;;  %v373_v23 = vsel %vm276_vm0, %v1025_v19, 0.0 }
  0x33   : > { %v1037_v26 = vpop.eup %887  ;;  %v366_v27 = vcombine.high %v1029_v21, %v1029_v21  ;;  %v374_v28 = vrot.slane %v373_v23, 4  ;;  %v387_v29 = vsel %vm276_vm0, %v1029_v21, 0.0 }
  0x34   : > { %v367_v31 = vcombine.high %v1037_v26, %v1037_v26  ;;  %v380_v32 = vsel %vm276_vm0, %v365_v22, 0.0  ;;  %v388_v33 = vrot.slane %v387_v29, 4  ;;  %v401_v34 = vsel %vm276_vm0, %v1037_v26, 0.0  ;;  %v1050_v35 = vpop.eup %889 }
  0x35   : > { %v375_v36 = vadd.f32 %v374_v28, %v373_v23  ;;  %v381_v37 = vrot.slane %v380_v32, 4  ;;  %v394_v38 = vsel %vm276_vm0, %v366_v27, 0.0  ;;  %v402_v39 = vrot.slane %v401_v34, 4 }
  0x36   : > { %v368_v40 = vcombine.high %v1050_v35, %v1050_v35  ;;  %v389_v41 = vadd.f32 %v388_v33, %v387_v29  ;;  %v395_v42 = vrot.slane %v394_v38, 4  ;;  %v408_v43 = vsel %vm276_vm0, %v367_v31, 0.0 }
  0x37   : > { %v376_v44 = vrot.slane %v375_v36, 2  ;;  %v382_v45 = vadd.f32 %v381_v37, %v380_v32  ;;  %v403_v46 = vadd.f32 %v402_v39, %v401_v34  ;;  %v409_v47 = vrot.slane %v408_v43, 4  ;;  %v1063_v39 = vld [vmem:[%s1005_s22 + $0x10] sm:$0x77] }
  0x38   : > { %v390_v48 = vrot.slane %v389_v41, 2  ;;  %v396_v49 = vadd.f32 %v395_v42, %v394_v38  ;;  %v415_v50 = vsel %vm276_vm0, %v1050_v35, 0.0  ;;  %v422_v51 = vsel %vm276_vm0, %v368_v40, 0.0 }
  0x39   : > { %v377_v52 = vadd.f32 %v376_v44, %v375_v36  ;;  %v383_v53 = vrot.slane %v382_v45, 2  ;;  %v404_v54 = vrot.slane %v403_v46, 2  ;;  %v410_v55 = vadd.f32 %v409_v47, %v408_v43 }
  0x3a   : > { %v391_v56 = vadd.f32 %v390_v48, %v389_v41  ;;  %v397_v57 = vrot.slane %v396_v49, 2  ;;  %v416_v58 = vrot.slane %v415_v50, 4  ;;  %v423_v59 = vrot.slane %v422_v51, 4 }
  0x3b   : > { %v378_v60 = vrot.slane %v377_v52, 1  ;;  %v384_v61 = vadd.f32 %v383_v53, %v382_v45  ;;  %v405_v62 = vadd.f32 %v404_v54, %v403_v46  ;;  %v411_v63 = vrot.slane %v410_v55, 2 }
  0x3c   : > { %v392_v4 = vrot.slane %v391_v56, 1  ;;  %v398_v5 = vadd.f32 %v397_v57, %v396_v49  ;;  %v417_v6 = vadd.f32 %v416_v58, %v415_v50  ;;  %v424_v7 = vadd.f32 %v423_v59, %v422_v51  ;;  %v1077_v51 = vld [vmem:[%s1005_s22 + $0x18] sm:$0x77] }
  0x3d   : > { %v379_v8 = vadd.f32 %v378_v60, %v377_v52  ;;  %v385_v9 = vrot.slane %v384_v61, 1  ;;  %v406_v10 = vrot.slane %v405_v62, 1  ;;  %v412_v11 = vadd.f32 %v411_v63, %v410_v55 }
  0x3e   : > { %v393_v12 = vadd.f32 %v392_v4, %v391_v56  ;;  %v399_v13 = vrot.slane %v398_v5, 1  ;;  %v418_v14 = vrot.slane %v417_v6, 2  ;;  %v425_v0 = vrot.slane %v424_v7, 2 }
  0x3f   : > { %v386_v2 = vadd.f32 %v385_v9, %v384_v61  ;;  %v407_v15 = vadd.f32 %v406_v10, %v405_v62  ;;  %v413_v17 = vrot.slane %v412_v11, 1  ;;  %v667_v22 = vsel %vm276_vm0, %v639_v20, 0.0 }
  0x40   : > { %v400_v23 = vadd.f32 %v399_v13, %v398_v5  ;;  %v419_v27 = vadd.f32 %v418_v14, %v417_v6  ;;  %v426_v28 = vadd.f32 %v425_v0, %v424_v7  ;;  %v655_v32 = vadd.f32 %v654_v24, %v1019_v18 }
  0x41   : > { %v414_v29 = vadd.f32 %v413_v17, %v412_v11  ;;  %v437_v31 = vcombine.low %v379_v8, %v386_v2  ;;  %v662_v33 = vadd.f32 %v661_v25, %v1023_v3  ;;  %v668_v38 = vrot.slane %v667_v22, 4 }
  0x42   : > { %v420_v34 = vrot.slane %v419_v27, 1  ;;  %v427_v36 = vrot.slane %v426_v28, 1  ;;  %v438_v37 = vcombine.low %v393_v12, %v400_v23  ;;  %v649_v41 = vrot.slane %v1043_v30, 2 }
  0x43   : > { %v439_v40 = vcombine.low %v407_v15, %v414_v29  ;;  %891 = vrcp.f32 %v437_v31  ;;  %v640_v43 = vcombine.high %v1063_v39, %v1063_v39  ;;  %v674_v18 = vsel %vm276_vm0, %v1063_v39, 0.0 }
  0x44   : > { %v421_v20 = vadd.f32 %v420_v34, %v419_v27  ;;  %v428_v42 = vadd.f32 %v427_v36, %v426_v28  ;;  %893 = vrcp.f32 %v438_v37  ;;  %v656_v24 = vrot.slane %v655_v32, 2 }
  0x45   : > { %895 = vrcp.f32 %v439_v40  ;;  %v663_v25 = vrot.slane %v662_v33, 2  ;;  %v669_v44 = vadd.f32 %v668_v38, %v667_v22  ;;  %v650_v45 = vadd.f32 %v649_v41, %v1043_v30 }
  0x46   : > { %v440_v3 = vcombine.low %v421_v20, %v428_v42  ;;  %v675_v46 = vrot.slane %v674_v18, 4  ;;  %v681_v47 = vsel %vm276_vm0, %v640_v43, 0.0  ;;  %v1072_v48 = vadd.f32 %v656_v24, %v655_v32 }
  0x47   : > { %v1074_v49 = vadd.f32 %v663_v25, %v662_v33  ;;  %v670_v50 = vrot.slane %v669_v44, 2  ;;  %v651_v52 = vrot.slane %v650_v45, 1  ;;  %v682_v53 = vrot.slane %v681_v47, 4 }
  0x48   : > { %897 = vrcp.f32 %v440_v3  ;;  %v1079_v54 = vadd.f32 %v675_v46, %v674_v18  ;;  %v1083_v55 = vsel %vm276_vm0, %v1077_v51, 0.0  ;;  %v641_v56 = vcombine.high %v1077_v51, %v1077_v51 }
  0x49   : > { %v658_v59 = vrot.slane %v1072_v48, 1  ;;  %v665_v60 = vrot.slane %v1074_v49, 1  ;;  %v1092_v61 = vadd.f32 %v670_v50, %v669_v44  ;;  %v1097_v4 = vadd.f32 %v651_v52, %v650_v45 }
  0x4a   : > { %v1099_v5 = vadd.f32 %v682_v53, %v681_v47  ;;  %v689_v6 = vrot.slane %v1083_v55, 4  ;;  %v677_v9 = vrot.slane %v1079_v54, 2  ;;  %v1115_v12 = vsel %vm276_vm0, %v641_v56, 0.0 }
  0x4d   : > { %v892_v30 = vpop.eup %891 }
  0x4e   : > { %v894_v57 = vpop.eup %893  ;;  %v1088_v58 = vmul.f32 %v892_v30, %v1025_v19 }
  0x4f   : > { %v896_v62 = vpop.eup %895  ;;  %v1095_v63 = vmul.f32 %v894_v57, %v1029_v21 }
  0x50   : > { %v1103_v7 = vmul.f32 %v896_v62, %v1037_v26  ;;  %v457_v19 = vcombine.high %v1088_v58, %v1088_v58  ;;  %v465_v8 = vsel %vm276_vm0, %v1088_v58, 0.0 }
  0x51   : > { %v458_v21 = vcombine.high %v1095_v63, %v1095_v63  ;;  %v466_v10 = vrot.slane %v465_v8, 4  ;;  %v479_v11 = vsel %vm276_vm0, %v1095_v63, 0.0 }
  0x52   : > { %v898_v26 = vpop.eup %897  ;;  %v459_v13 = vcombine.high %v1103_v7, %v1103_v7  ;;  %v472_v14 = vsel %vm276_vm0, %v457_v19, 0.0  ;;  %v480_v0 = vrot.slane %v479_v11, 4  ;;  %v493_v2 = vsel %vm276_vm0, %v1103_v7, 0.0 }
  0x53   : > { %v1123_v15 = vmul.f32 %v898_v26, %v1050_v35  ;;  %v467_v17 = vadd.f32 %v466_v10, %v465_v8  ;;  %v473_v22 = vrot.slane %v472_v14, 4  ;;  %v486_v23 = vsel %vm276_vm0, %v458_v21, 0.0 }
  0x54   : > { %v481_v27 = vadd.f32 %v480_v0, %v479_v11  ;;  %v487_v28 = vrot.slane %v486_v23, 4  ;;  %v494_v29 = vrot.slane %v493_v2, 4  ;;  %v500_v31 = vsel %vm276_vm0, %v459_v13, 0.0 }
  0x55   : > { %v460_v32 = vcombine.high %v1123_v15, %v1123_v15  ;;  %v468_v33 = vrot.slane %v467_v17, 2  ;;  %v474_v34 = vadd.f32 %v473_v22, %v472_v14  ;;  %v501_v36 = vrot.slane %v500_v31, 4 }
  0x56   : > { %v482_v37 = vrot.slane %v481_v27, 2  ;;  %v488_v38 = vadd.f32 %v487_v28, %v486_v23  ;;  %v495_v40 = vadd.f32 %v494_v29, %v493_v2  ;;  %v507_v35 = vsel %vm276_vm0, %v1123_v15, 0.0 }
  0x57   : > { %v469_v41 = vadd.f32 %v468_v33, %v467_v17  ;;  %v475_v20 = vrot.slane %v474_v34, 2  ;;  %v502_v42 = vadd.f32 %v501_v36, %v500_v31  ;;  %v508_v43 = vrot.slane %v507_v35, 4 }
  0x58   : > { %v483_v18 = vadd.f32 %v482_v37, %v481_v27  ;;  %v489_v3 = vrot.slane %v488_v38, 2  ;;  %v496_v24 = vrot.slane %v495_v40, 2  ;;  %v514_v25 = vsel %vm276_vm0, %v460_v32, 0.0 }
  0x59   : > { %v470_v44 = vrot.slane %v469_v41, 1  ;;  %v476_v45 = vadd.f32 %v475_v20, %v474_v34  ;;  %v503_v46 = vrot.slane %v502_v42, 2  ;;  %v509_v47 = vadd.f32 %v508_v43, %v507_v35 }
  0x5a   : > { %v484_v50 = vrot.slane %v483_v18, 1  ;;  %v490_v52 = vadd.f32 %v489_v3, %v488_v38  ;;  %v497_v53 = vadd.f32 %v496_v24, %v495_v40  ;;  %v515_v30 = vrot.slane %v514_v25, 4 }
  0x5b   : > { %v471_v56 = vadd.f32 %v470_v44, %v469_v41  ;;  %v477_v57 = vrot.slane %v476_v45, 1  ;;  %v504_v62 = vadd.f32 %v503_v46, %v502_v42  ;;  %v510_v19 = vrot.slane %v509_v47, 2 }
  0x5c   : > { %v485_v8 = vadd.f32 %v484_v50, %v483_v18  ;;  %v491_v21 = vrot.slane %v490_v52, 1  ;;  %v498_v10 = vrot.slane %v497_v53, 1  ;;  %v516_v11 = vadd.f32 %v515_v30, %v514_v25 }
  0x5d   : > { %v478_v26 = vadd.f32 %v477_v57, %v476_v45  ;;  %v505_v13 = vrot.slane %v504_v62, 1  ;;  %v511_v14 = vadd.f32 %v510_v19, %v509_v47  ;;  %v521_v0 = vsub.f32 1.0, %v471_v56 }
  0x5e   : > { %v492_v2 = vadd.f32 %v491_v21, %v490_v52  ;;  %v499_v17 = vadd.f32 %v498_v10, %v497_v53  ;;  %v517_v22 = vrot.slane %v516_v11, 2  ;;  %v523_v23 = vsub.f32 1.0, %v485_v8 }
  0x5f   : > { %v506_v27 = vadd.f32 %v505_v13, %v504_v62  ;;  %v512_v28 = vrot.slane %v511_v14, 1  ;;  %v522_v29 = vsub.f32 1.0, %v478_v26  ;;  %v684_v31 = vrot.slane %v1099_v5, 2 }
  0x60   : > { %v518_v32 = vadd.f32 %v517_v22, %v516_v11  ;;  %v524_v33 = vsub.f32 1.0, %v492_v2  ;;  %v525_v34 = vsub.f32 1.0, %v499_v17  ;;  %v678_v36 = vadd.f32 %v677_v9, %v1079_v54 }
  0x61   : > { %v513_v37 = vadd.f32 %v512_v28, %v511_v14  ;;  %v526_v38 = vsub.f32 1.0, %v506_v27  ;;  %v537_v40 = vcombine.low %v521_v0, %v522_v29  ;;  %v690_v35 = vadd.f32 %v689_v6, %v1083_v55 }
  0x62   : > { %v519_v41 = vrot.slane %v518_v32, 1  ;;  %v538_v20 = vcombine.low %v523_v23, %v524_v33  ;;  %v659_v42 = vadd.f32 %v658_v59, %v1072_v48  ;;  %v672_v43 = vrot.slane %v1092_v61, 1 }
  0x63   : > { %v539_v18 = vcombine.low %v525_v34, %v526_v38  ;;  %v545_v3 = vmul.f32 %v537_v40, %v1088_v58  ;;  %v1145_v54 = vadd.f32 %v684_v31, %v1099_v5  ;;  %v696_v9 = vrot.slane %v1115_v12, 4 }
  0x64   : > { %v520_v24 = vadd.f32 %v519_v41, %v518_v32  ;;  %v527_v25 = vsub.f32 1.0, %v513_v37  ;;  %v546_v55 = vmul.f32 %v538_v20, %v1095_v63  ;;  %v679_v6 = vrot.slane %v678_v36, 1 }
  0x65   : > { %v547_v44 = vmul.f32 %v539_v18, %v1103_v7  ;;  %v549_v45 = vmul.f32 %v545_v3, %v1009_v1  ;;  %v691_v48 = vrot.slane %v690_v35, 2  ;;  %v666_v58 = vadd.f32 %v665_v60, %v1074_v49 }
  0x66   : > { %v528_v59 = vsub.f32 1.0, %v520_v24  ;;  %v550_v46 = vmul.f32 %v546_v55, %v1016_v16  ;;  %v702_v5 = vadd.f32 %v659_v42, %v1097_v4  ;;  %v673_v63 = vadd.f32 %v672_v43, %v1092_v61 }
  0x67   : > { %v551_v47 = vmul.f32 %v547_v44, %v1063_v39  ;;  %v553_v50 = vmul.f32 %v549_v45, %v549_v45  ;;  %v1159_v52 = vadd.f32 %v696_v9, %v1115_v12  ;;  %v1161_v53 = vadd.f32 %v679_v6, %v678_v36 }
  0x68   : > { %v540_v7 = vcombine.low %v527_v25, %v528_v59  ;;  %v554_v1 = vmul.f32 %v550_v46, %v550_v46  ;;  %v686_v16 = vrot.slane %v1145_v54, 1  ;;  %v1165_v60 = vadd.f32 %v691_v48, %v690_v35 }
  0x69   : > { %v555_v30 = vmul.f32 %v551_v47, %v551_v47  ;;  %v561_v56 = vcombine.high %v553_v50, %v553_v50  ;;  %v569_v49 = vsel %vm276_vm0, %v553_v50, 0.0  ;;  %v703_v31 = vadd.f32 %v702_v5, %v666_v58 }
  0x6a   : > { %v548_v39 = vmul.f32 %v540_v7, %v1123_v15  ;;  %v562_v4 = vcombine.high %v554_v1, %v554_v1  ;;  %v570_v57 = vrot.slane %v569_v49, 4  ;;  %v583_v61 = vsel %vm276_vm0, %v554_v1, 0.0 }
  0x6b   : > { %v563_v12 = vcombine.high %v555_v30, %v555_v30  ;;  %v576_v62 = vsel %vm276_vm0, %v561_v56, 0.0  ;;  %v584_v19 = vrot.slane %v583_v61, 4  ;;  %v597_v8 = vsel %vm276_vm0, %v555_v30, 0.0 }
  0x6c   : > { %v552_v21 = vmul.f32 %v548_v39, %v1077_v51  ;;  %v571_v10 = vadd.f32 %v570_v57, %v569_v49  ;;  %v577_v11 = vrot.slane %v576_v62, 4  ;;  %v590_v26 = vsel %vm276_vm0, %v562_v4, 0.0 }
  0x6d   : > { %v585_v13 = vadd.f32 %v584_v19, %v583_v61  ;;  %v591_v14 = vrot.slane %v590_v26, 4  ;;  %v598_v0 = vrot.slane %v597_v8, 4  ;;  %v604_v15 = vsel %vm276_vm0, %v563_v12, 0.0 }
  0x6e   : > { %v556_v2 = vmul.f32 %v552_v21, %v552_v21  ;;  %v572_v17 = vrot.slane %v571_v10, 2  ;;  %v578_v22 = vadd.f32 %v577_v11, %v576_v62  ;;  %v605_v23 = vrot.slane %v604_v15, 4 }
  0x6f   : > { %v586_v27 = vrot.slane %v585_v13, 2  ;;  %v592_v28 = vadd.f32 %v591_v14, %v590_v26  ;;  %v599_v29 = vadd.f32 %v598_v0, %v597_v8  ;;  %v698_v48 = vrot.slane %v1159_v52, 2 }
  0x70   : > { %v564_v32 = vcombine.high %v556_v2, %v556_v2  ;;  %v573_v33 = vadd.f32 %v572_v17, %v571_v10  ;;  %v579_v51 = vrot.slane %v578_v22, 2  ;;  %v606_v34 = vadd.f32 %v605_v23, %v604_v15 }
  0x71   : > { %v587_v36 = vadd.f32 %v586_v27, %v585_v13  ;;  %v593_v37 = vrot.slane %v592_v28, 2  ;;  %v600_v38 = vrot.slane %v599_v29, 2  ;;  %v611_v40 = vsel %vm276_vm0, %v556_v2, 0.0 }
  0x72   : > { %v574_v35 = vrot.slane %v573_v33, 1  ;;  %v580_v41 = vadd.f32 %v579_v51, %v578_v22  ;;  %v607_v20 = vrot.slane %v606_v34, 2  ;;  %v612_v42 = vrot.slane %v611_v40, 4 }
  0x73   : > { %v588_v43 = vrot.slane %v587_v36, 1  ;;  %v594_v18 = vadd.f32 %v593_v37, %v592_v28  ;;  %v601_v3 = vadd.f32 %v600_v38, %v599_v29  ;;  %v618_v9 = vsel %vm276_vm0, %v564_v32, 0.0 }
  0x74   : > { %v575_v24 = vadd.f32 %v574_v35, %v573_v33  ;;  %v581_v25 = vrot.slane %v580_v41, 1  ;;  %v608_v55 = vadd.f32 %v607_v20, %v606_v34  ;;  %v613_v6 = vadd.f32 %v612_v42, %v611_v40 }
  0x75   : > { %v595_v44 = vrot.slane %v594_v18, 1  ;;  %v619_v45 = vrot.slane %v618_v9, 4  ;;  %v704_v59 = vadd.f32 %v703_v31, %v673_v63  ;;  %v589_v58 = vadd.f32 %v588_v43, %v587_v36 }
  0x76   : > { %v582_v46 = vadd.f32 %v581_v25, %v580_v41  ;;  %v602_v5 = vrot.slane %v601_v3, 1  ;;  %v614_v47 = vrot.slane %v613_v6, 2  ;;  %v609_v1 = vrot.slane %v608_v55, 1 }
  0x77   : > { %v620_v50 = vadd.f32 %v619_v45, %v618_v9  ;;  %v596_v7 = vadd.f32 %v595_v44, %v594_v18  ;;  %v687_v39 = vadd.f32 %v686_v16, %v1145_v54  ;;  %v693_v4 = vrot.slane %v1165_v60, 1 }
  0x78   : > { %v615_v30 = vadd.f32 %v614_v47, %v613_v6  ;;  %v625_v56 = vadd.f32 %v582_v46, %v575_v24  ;;  %v699_v57 = vadd.f32 %v698_v48, %v1159_v52  ;;  %v603_v61 = vadd.f32 %v602_v5, %v601_v3 }
  0x79   : > { %v621_v49 = vrot.slane %v620_v50, 2  ;;  %v705_v62 = vadd.f32 %v704_v59, %v1161_v53  ;;  %v610_v8 = vadd.f32 %v609_v1, %v608_v55  ;;  %v694_v11 = vadd.f32 %v693_v4, %v1165_v60 }
  0x7a   : > { %v616_v63 = vrot.slane %v615_v30, 1  ;;  %v626_v12 = vadd.f32 %v625_v56, %v589_v58  ;;  %v700_v54 = vrot.slane %v699_v57, 1 }
  0x7b   : > { %v622_v19 = vadd.f32 %v621_v49, %v620_v50  ;;  %v706_v16 = vadd.f32 %v705_v62, %v687_v39 }
  0x7c   : > { %v627_v21 = vadd.f32 %v626_v12, %v596_v7  ;;  %v617_v26 = vadd.f32 %v616_v63, %v615_v30  ;;  %v701_v15 = vadd.f32 %v700_v54, %v699_v57 }
  0x7d   : > { %v623_v10 = vrot.slane %v622_v19, 1  ;;  %v707_v2 = vadd.f32 %v706_v16, %v694_v11 }
  0x7e   : > { %v628_v13 = vadd.f32 %v627_v21, %v603_v61 }
  0x7f   : > { %v624_v14 = vadd.f32 %v623_v10, %v622_v19  ;;  %v708_v53 = vadd.f32 %v707_v2, %v701_v15 }
  0x80   : > { %v629_v0 = vadd.f32 %v628_v13, %v610_v8 }
  0x82   : > { %v630_v52 = vadd.f32 %v629_v0, %v617_v26 }
  0x84   : > { %v631_v17 = vadd.f32 %v630_v52, %v624_v14 }
  0x86   : > { %632 = vadd.xlane.f32.xlu0 %v631_v17 }
  0x8a   : > { %709 = vadd.xlane.f32.xlu0 %v708_v53 }
 0x113   : > { %v633_v60 = vpop.xlane.xlu0 %632 }
 0x114   : > { %712 = vst.msk [vmem:[%s249_s25] sm:$0x1] %vm711_vm1, %v633_v60 }
 0x117   : > { %v710_v22 = vpop.xlane.xlu0 %709 }
 0x118   : > { %713 = vst.msk [vmem:[%s255_s28] sm:$0x1] %vm711_vm1, %v710_v22 }
 0x119 PF: > { %s14_s14 = sadd.s32 1, %s921_s14   ;;  %s1205_s12 = smov %s917_s13 }
 0x11a   : > { %p11_p5 = scmp.ge.s32.totalorder %s14_s14, 4   ;;  %s1206_s13 = smov %s1208_s15 }
 0x11c   :  { %13 = sbr.rel (!%p11_p5) target bundleno = 2 (0x2), region = 73 }

</bundles_post_ra>
